<compile_context>
chip_gen: v6e
topology: v6e:2x2x1
jax: 0.10.0
libtpu: 0.0.40
codegen_flags: <defaults>
</compile_context>

<pallas_src>
import functools

import jax
import jax.numpy as jnp
from jax.experimental import pallas as pl
from jax.experimental.pallas import tpu as pltpu


# ------------------------------ small helpers -------------------------------


def _round_up(x, m):
    return ((x + m - 1) // m) * m


def _pick_tile(dim, candidates):
    """Largest candidate tile that divides dim, else the full dim."""
    for c in candidates:
        if dim % c == 0:
            return c
    return dim


# -------- fused (LayerNorm?) -> matmul -> +bias -> (GELU?) -> (+residual?) --------


def _fused_mm_kernel(*refs, ln, act, residual, eps):
    idx = 0
    x_ref = refs[idx]; idx += 1
    if ln:
        g_ref = refs[idx]
        bln_ref = refs[idx + 1]
        idx += 2
    w_ref = refs[idx]
    b_ref = refs[idx + 1]
    idx += 2
    if residual:
        r_ref = refs[idx]; idx += 1
    o_ref = refs[idx]

    x = x_ref[...].astype(jnp.float32)
    if ln:  # LayerNorm prologue (full-K row statistics, f32)
        mean = jnp.mean(x, axis=-1, keepdims=True)
        var = jnp.mean(jnp.square(x - mean), axis=-1, keepdims=True)
        x = (x - mean) * jax.lax.rsqrt(var + eps)
        x = x * g_ref[...].astype(jnp.float32) + bln_ref[...].astype(jnp.float32)

    # bf16 into the MXU, f32 accumulation.
    acc = jnp.dot(x.astype(jnp.bfloat16), w_ref[...].astype(jnp.bfloat16),
                  preferred_element_type=jnp.float32)
    acc = acc + b_ref[...].astype(jnp.float32)
    if act == "gelu":  # exact (erf) GELU, matching nn.GELU default, in f32
        acc = 0.5 * acc * (1.0 + jax.lax.erf(acc * 0.7071067811865476))
    if residual:
        acc = acc + r_ref[...].astype(jnp.float32)
    o_ref[...] = acc.astype(o_ref.dtype)


def fused_matmul(x, w, b, *, gamma=None, beta=None, residual=None,
                 activation=None, eps=1e-6, out_dtype=None):
    """out = (act(LN(x) @ w + b)) [+ residual], tiled over (M, N), full K per tile."""
    M, K = x.shape
    K2, N = w.shape
    assert K == K2
    tm = _pick_tile(M, (256, 128, 64, 32, 16, 8))
    tn = _pick_tile(N, (512, 256, 128))
    ln = gamma is not None
    has_res = residual is not None
    out_dtype = out_dtype or x.dtype

    in_specs = [pl.BlockSpec((tm, K), lambda i, j: (i, 0))]
    args = [x]
    if ln:
        in_specs.append(pl.BlockSpec((1, K), lambda i, j: (0, 0)))
        in_specs.append(pl.BlockSpec((1, K), lambda i, j: (0, 0)))
        args.append(gamma.reshape(1, K).astype(jnp.float32))
        args.append(beta.reshape(1, K).astype(jnp.float32))
    in_specs.append(pl.BlockSpec((K, tn), lambda i, j: (0, j)))
    in_specs.append(pl.BlockSpec((1, tn), lambda i, j: (0, j)))
    args.append(w)
    args.append(b.reshape(1, N))
    if has_res:
        in_specs.append(pl.BlockSpec((tm, tn), lambda i, j: (i, j)))
        args.append(residual)

    kernel = functools.partial(_fused_mm_kernel, ln=ln, act=activation,
                               residual=has_res, eps=eps)
    return pl.pallas_call(
        kernel,
        out_shape=jax.ShapeDtypeStruct((M, N), out_dtype),
        grid=(M // tm, N // tn),
        in_specs=in_specs,
        out_specs=pl.BlockSpec((tm, tn), lambda i, j: (i, j)),
        compiler_params=pltpu.CompilerParams(
            dimension_semantics=("parallel", "parallel")),
    )(*args)


# ---------------------- multi-head attention (qkv in place) -----------------


def _attention_kernel(qkv_ref, o_ref, *, nheads, head_dim, seq_len, scale):
    """One batch element: softmax(q k^T * scale) v for all heads.

    qkv_ref: (1, S_pad, 3*D) laid out [q(h0..hH-1) | k(...) | v(...)] on the last dim
    (exactly the qkv-Linear output layout), so no HBM transpose is needed.
    """
    s_pad = qkv_ref.shape[1]
    d = nheads * head_dim
    qkv = qkv_ref[0].astype(jnp.float32)           # (S_pad, 3D)
    q_all = qkv[:, 0:d] * scale                    # fold scale into q (S*D muls total)
    k_all = qkv[:, d:2 * d]
    v_all = qkv[:, 2 * d:3 * d]

    # Additive key-padding mask computed ONCE, broadcast-added per head.
    need_mask = seq_len < s_pad
    if need_mask:
        key_ids = jax.lax.broadcasted_iota(jnp.int32, (1, s_pad), 1)
        mask_bias = jnp.where(key_ids < seq_len, 0.0, -1e30).astype(jnp.float32)

    outs = []
    for h in range(nheads):                        # static unroll over heads
        lo, hi = h * head_dim, (h + 1) * head_dim
        qh = q_all[:, lo:hi].astype(jnp.bfloat16)
        kh = k_all[:, lo:hi].astype(jnp.bfloat16)
        vh = v_all[:, lo:hi].astype(jnp.bfloat16)
        # q @ k^T without a materialized transpose: contract the last dims.
        s = jax.lax.dot_general(qh, kh,
                                dimension_numbers=(((1,), (1,)), ((), ())),
                                preferred_element_type=jnp.float32)   # (S_pad, S_pad)
        if need_mask:
            s = s + mask_bias
        m = jnp.max(s, axis=-1, keepdims=True)
        p = jnp.exp(s - m)
        p = p * pl.reciprocal(jnp.sum(p, axis=-1, keepdims=True), approx=True)
        oh = jnp.dot(p.astype(jnp.bfloat16), vh,
                     preferred_element_type=jnp.float32)              # (S_pad, hd)
        outs.append(oh)
    o = outs[0] if len(outs) == 1 else jnp.concatenate(outs, axis=-1)
    o_ref[0] = o.astype(o_ref.dtype)               # lane-dense full-D store


def attention(qkv, nheads, head_dim, seq_len, scale, out_dtype):
    """qkv: (B, S_pad, 3*D) -> (B, S_pad, D) with heads concatenated along D."""
    B, s_pad, three_d = qkv.shape
    d = nheads * head_dim
    kernel = functools.partial(_attention_kernel, nheads=nheads,
                               head_dim=head_dim, seq_len=seq_len, scale=scale)
    return pl.pallas_call(
        kernel,
        out_shape=jax.ShapeDtypeStruct((B, s_pad, d), out_dtype),
        grid=(B,),
        in_specs=[pl.BlockSpec((1, s_pad, three_d), lambda b: (b, 0, 0))],
        out_specs=pl.BlockSpec((1, s_pad, d), lambda b: (b, 0, 0)),
        compiler_params=pltpu.CompilerParams(dimension_semantics=("parallel",)),
    )(qkv)


# ------------------------------- ViT forward --------------------------------


def vit_forward(x, params, cfg):
    B, C, H, W = x.shape
    P, D, NH = cfg["patch"], cfg["dim"], cfg["heads"]
    HD = D // NH
    nph, npw = H // P, W // P
    N = nph * npw
    S = N + 1
    S_pad = _round_up(S, 8)                        # sublane-friendly sequence
    scale = float(HD) ** -0.5

    # --- patch embedding: Conv2d(k=P, stride=P) == im2col (glue) + fused matmul ---
    patches = x.reshape(B, C, nph, P, npw, P)
    patches = patches.transpose(0, 2, 4, 1, 3, 5).reshape(B * N, C * P * P)
    tok = fused_matmul(patches, params["w_pe"], params["b_pe"]).reshape(B, N, D)

    # --- prepend cls token, add positional embedding, pad sequence (glue) ---
    cls = jnp.broadcast_to(params["cls_token"], (B, 1, D))
    tok = jnp.concatenate([cls, tok], axis=1) + params["pos_embed"]   # (B, S, D)
    if S_pad > S:
        tok = jnp.pad(tok, ((0, 0), (0, S_pad - S), (0, 0)))
    tok2d = tok.reshape(B * S_pad, D)

    for blk in params["blocks"]:
        # attention sub-block: LN fused into the qkv matmul; residual fused into proj.
        qkv = fused_matmul(tok2d, blk["w_qkv"], blk["b_qkv"],
                           gamma=blk["ln1_g"], beta=blk["ln1_b"])     # (B*S_pad, 3D)
        o = attention(qkv.reshape(B, S_pad, 3 * D), NH, HD, S, scale, tok2d.dtype)
        tok2d = fused_matmul(o.reshape(B * S_pad, D), blk["w_proj"], blk["b_proj"],
                             residual=tok2d)

        # MLP sub-block: LN + GELU fused into fc1; residual fused into fc2.
        h = fused_matmul(tok2d, blk["w_fc1"], blk["b_fc1"],
                         gamma=blk["ln2_g"], beta=blk["ln2_b"], activation="gelu")
        tok2d = fused_matmul(h, blk["w_fc2"], blk["b_fc2"], residual=tok2d)

    # --- final norm + classification head on the cls token (padded to 128 lanes) ---
    cls_tok = tok2d.reshape(B, S_pad, D)[:, 0, :]                     # (B, D)
    NC = cfg["num_classes"]
    NC_pad = _round_up(max(NC, 128), 128)
    w_head = jnp.pad(params["w_head"], ((0, 0), (0, NC_pad - NC)))
    b_head = jnp.pad(params["b_head"], ((0, NC_pad - NC),))
    logits = fused_matmul(cls_tok, w_head, b_head,
                          gamma=params["lnf_g"], beta=params["lnf_b"])
    return logits[:, :NC]


# ------------------------------- params init --------------------------------


def init_params(key, cfg):
    C, P, D = cfg["in_chans"], cfg["patch"], cfg["dim"]
    S = cfg["seq"]
    HID = cfg["mlp_hidden"]
    NC = cfg["num_classes"]

    def nrm(k, shape, std=0.02, dtype=jnp.float32):
        return (jax.random.normal(k, shape, jnp.float32) * std).astype(dtype)

    keys = iter(jax.random.split(key, 8 + 6 * cfg["depth"]))
    wdt = jnp.bfloat16  # weights stored bf16: halves weight DMA, feeds MXU natively
    params = {
        "w_pe": nrm(next(keys), (C * P * P, D), dtype=wdt),
        "b_pe": jnp.zeros((D,), jnp.float32),
        "cls_token": nrm(next(keys), (1, 1, D)),
        "pos_embed": nrm(next(keys), (1, S, D)),
        "lnf_g": jnp.ones((D,), jnp.float32),
        "lnf_b": jnp.zeros((D,), jnp.float32),
        "w_head": nrm(next(keys), (D, NC), dtype=wdt),
        "b_head": jnp.zeros((NC,), jnp.float32),
        "blocks": [],
    }
    for _ in range(cfg["depth"]):
        params["blocks"].append({
            "ln1_g": jnp.ones((D,), jnp.float32),
            "ln1_b": jnp.zeros((D,), jnp.float32),
            "w_qkv": nrm(next(keys), (D, 3 * D), dtype=wdt),
            "b_qkv": jnp.zeros((3 * D,), jnp.float32),
            "w_proj": nrm(next(keys), (D, D), dtype=wdt),
            "b_proj": jnp.zeros((D,), jnp.float32),
            "ln2_g": jnp.ones((D,), jnp.float32),
            "ln2_b": jnp.zeros((D,), jnp.float32),
            "w_fc1": nrm(next(keys), (D, HID), dtype=wdt),
            "b_fc1": jnp.zeros((HID,), jnp.float32),
            "w_fc2": nrm(next(keys), (HID, D), dtype=wdt),
            "b_fc2": jnp.zeros((D,), jnp.float32),
        })
    return params


# ----------------------------------- main ------------------------------------


if __name__ == "__main__":
    # Small-scale ViT consistent with vit_base_patch16_224 architecture
    # (patch=16, pre-norm blocks, MHSA + GELU MLP, cls-token head -> 6 classes).
    cfg = {
        "batch": 2,
        "in_chans": 3,
        "img": 32,          # 32x32 image, patch 16 -> 2x2 = 4 patches
        "patch": 16,
        "dim": 64,          # scaled down from 768
        "heads": 4,
        "depth": 2,         # scaled down from 12
        "mlp_hidden": 256,  # 4 * dim
        "num_classes": 6,
    }
    cfg["seq"] = (cfg["img"] // cfg["patch"]) ** 2 + 1

    key = jax.random.PRNGKey(0)
    k_x, k_p = jax.random.split(key)
    x = jax.random.normal(k_x, (cfg["batch"], cfg["in_chans"], cfg["img"], cfg["img"]),
                          dtype=jnp.float32)
    params = init_params(k_p, cfg)

    logits = vit_forward(x, params, cfg)
    logits = jax.block_until_ready(logits)
    assert logits.shape == (cfg["batch"], cfg["num_classes"])
    assert bool(jnp.all(jnp.isfinite(logits)))
    print("KERNEL_OK")
</pallas_src>

<mosaic_0001>
module attributes {stable_mosaic.version = 11 : i64} {
  func.func @_fused_mm_kernel(%arg0: i32, %arg1: i32, %arg2: memref<8x768xf32, #tpu.memory_space<vmem>>, %arg3: memref<768x64xbf16, #tpu.memory_space<vmem>>, %arg4: memref<1x64xf32, #tpu.memory_space<vmem>>, %arg5: memref<8x64xf32, #tpu.memory_space<vmem>>) attributes {dimension_semantics = [#tpu.dimension_semantics<parallel>, #tpu.dimension_semantics<parallel>], iteration_bounds = array<i64: 1, 1>, scalar_prefetch = 0 : i64, scratch_operands = 0 : i64, tpu.core_type = #tpu.core_type<tc>, window_params = [{transform_indices = @transform_0, window_bounds = array<i64: 8, 768>}, {transform_indices = @transform_1, window_bounds = array<i64: 768, 64>}, {transform_indices = @transform_2, window_bounds = array<i64: 1, 64>}, {transform_indices = @transform_3, window_bounds = array<i64: 8, 64>}]} {
    %c0 = arith.constant 0 : index
    %c0_0 = arith.constant 0 : index
    %0 = vector.load %arg2[%c0, %c0_0] : memref<8x768xf32, #tpu.memory_space<vmem>>, vector<8x768xf32>
    %1 = arith.truncf %0 : vector<8x768xf32> to vector<8x768xbf16>
    %c0_1 = arith.constant 0 : index
    %c0_2 = arith.constant 0 : index
    %2 = vector.load %arg3[%c0_1, %c0_2] : memref<768x64xbf16, #tpu.memory_space<vmem>>, vector<768x64xbf16>
    %cst = arith.constant dense<0.000000e+00> : vector<8x64xf32>
    %3 = tpu.matmul %1, %2, %cst {dimension_numbers = #tpu.dot_dimension_numbers<[1], [0], [0], [1], [0, 0, 1, 1], [], []>} : vector<8x768xbf16>, vector<768x64xbf16>, vector<8x64xf32> -> vector<8x64xf32>
    %c0_3 = arith.constant 0 : index
    %c0_4 = arith.constant 0 : index
    %4 = vector.load %arg4[%c0_3, %c0_4] : memref<1x64xf32, #tpu.memory_space<vmem>>, vector<1x64xf32>
    %5 = vector.broadcast %4 : vector<1x64xf32> to vector<8x64xf32>
    %6 = arith.addf %3, %5 : vector<8x64xf32>
    %c0_5 = arith.constant 0 : index
    %c0_6 = arith.constant 0 : index
    %7 = vector.load %arg5[%c0_5, %c0_6] : memref<8x64xf32, #tpu.memory_space<vmem>>, vector<8x64xf32>
    tpu.vector_store %arg5[%c0_5, %c0_6], %6 {strides = array<i32>} : memref<8x64xf32, #tpu.memory_space<vmem>>, vector<8x64xf32>,
    return
  }
  func.func @transform_0(%arg0: i32, %arg1: i32) -> (i32, i32) {
    %c0_i32 = arith.constant 0 : i32
    %c0_i32_0 = arith.constant 0 : i32
    return %arg0, %c0_i32 : i32, i32
  }
  func.func @transform_1(%arg0: i32, %arg1: i32) -> (i32, i32) {
    %c0_i32 = arith.constant 0 : i32
    %c0_i32_0 = arith.constant 0 : i32
    return %c0_i32, %arg1 : i32, i32
  }
  func.func @transform_2(%arg0: i32, %arg1: i32) -> (i32, i32) {
    %c0_i32 = arith.constant 0 : i32
    %c0_i32_0 = arith.constant 0 : i32
    return %c0_i32, %arg1 : i32, i32
  }
  func.func @transform_3(%arg0: i32, %arg1: i32) -> (i32, i32) {
    %c0_i32 = arith.constant 0 : i32
    return %arg0, %arg1 : i32, i32
  }
}

</mosaic_0001>

<bundles_post_ra>
// kernel: tpu_custom_call.1
= control target key start
LH: loop header
LB: loop body
LE: loop exit
PB: predicated region body
PF: predicated region fallthrough
CT: control target
= control target key end

     0   :  { %s930_s0 = inlined_call_operand.vmem [shape: f32[8,768], index: 0, kind: input, shape index: {}]   ;;  %s931_s1 = inlined_call_operand.vmem [shape: bf16[768,64], index: 1, kind: input, shape index: {}]   ;;  %s932_s2 = inlined_call_operand.vmem [shape: f32[1,64], index: 2, kind: input, shape index: {}]   ;;  %s933_s3 = inlined_call_operand.hbm [shape: f32[8,64], index: 3, kind: output, shape index: {}]  }
   0x1   :  { %v671_v0 = vld [vmem:[%s931_s1 + $0x78] sm:$0xff]   ;;  %v675_v4 = vld [vmem:[%s931_s1 + $0x70] sm:$0xff]   ;;  %v679_v8 = vld [vmem:[%s931_s1 + $0x68] sm:$0xff]  }
   0x2   :  { %v672_v1 = vld [vmem:[%s931_s1 + $0x38] sm:$0xff]   ;;  %604 = vmatprep.subr.bf16.mxu0 %v671_v0  ;;  %v676_v5 = vld [vmem:[%s931_s1 + $0x30] sm:$0xff]   ;;  %v680_v9 = vld [vmem:[%s931_s1 + $0x28] sm:$0xff]  }
   0x3   :  { %v673_v2 = vld [vmem:[%s931_s1 + $0xf8] sm:$0xff]   ;;  %605 = vmatpush3.bf16.msra.mxu0 %v672_v1  ;;  %v677_v6 = vld [vmem:[%s931_s1 + $0xf0] sm:$0xff]   ;;  %v681_v10 = vld [vmem:[%s931_s1 + $0xe8] sm:$0xff]  }
   0x4   :  { %v674_v3 = vld [vmem:[%s931_s1 + $0xb8] sm:$0xff]   ;;  %626 = vmatprep.subr.bf16.mxu1 %v673_v2  ;;  %606 = vmatprep.subr.bf16.mxu0 %v675_v4  ;;  %v678_v7 = vld [vmem:[%s931_s1 + $0xb0] sm:$0xff]   ;;  %v682_v11 = vld [vmem:[%s931_s1 + $0xa8] sm:$0xff]  }
   0x5   :  { %627 = vmatpush3.bf16.msra.mxu1 %v674_v3  ;;  %v683_v12 = vld [vmem:[%s931_s1 + $0x60] sm:$0xff]   ;;  %v687_v16 = vld [vmem:[%s931_s1 + $0x58] sm:$0xff]   ;;  %v691_v20 = vld [vmem:[%s931_s1 + $0x50] sm:$0xff]  }
   0x6   :  { %628 = vmatprep.subr.bf16.mxu1 %v677_v6  ;;  %v684_v13 = vld [vmem:[%s931_s1 + $0x20] sm:$0xff]   ;;  %v688_v17 = vld [vmem:[%s931_s1 + $0x18] sm:$0xff]   ;;  %v692_v21 = vld [vmem:[%s931_s1 + $0x10] sm:$0xff]  }
   0x7   :  { %607 = vmatpush3.bf16.msra.mxu0 %v676_v5  ;;  %v685_v14 = vld [vmem:[%s931_s1 + $0xe0] sm:$0xff]   ;;  %v689_v18 = vld [vmem:[%s931_s1 + $0xd8] sm:$0xff]   ;;  %v693_v22 = vld [vmem:[%s931_s1 + $0xd0] sm:$0xff]  }
   0x8   :  { %608 = vmatprep.subr.bf16.mxu0 %v679_v8  ;;  %v686_v15 = vld [vmem:[%s931_s1 + $0xa0] sm:$0xff]   ;;  %v690_v19 = vld [vmem:[%s931_s1 + $0x98] sm:$0xff]   ;;  %v694_v23 = vld [vmem:[%s931_s1 + $0x90] sm:$0xff]  }
   0x9   :  { %629 = vmatpush3.bf16.msra.mxu1 %v678_v7  ;;  %v695_v24 = vld [vmem:[%s931_s1 + $0x48] sm:$0xff]   ;;  %v699_v28 = vld [vmem:[%s931_s1 + $0x40] sm:$0xff]   ;;  %v703_v36 = vld [vmem:[%s931_s1 + $0x178] sm:$0xff]  }
   0xa   :  { %630 = vmatprep.subr.bf16.mxu1 %v681_v10  ;;  %v696_v25 = vld [vmem:[%s931_s1 + $0x8] sm:$0xff]   ;;  %v700_v29 = vld [vmem:[%s931_s1] sm:$0xff]   ;;  %v19_v37 = vld [vmem:[%s930_s0 + $0x18] sm:$0xff] }
   0xb   :  { %609 = vmatpush3.bf16.msra.mxu0 %v680_v9  ;;  %v697_v26 = vld [vmem:[%s931_s1 + $0xc8] sm:$0xff]   ;;  %v701_v30 = vld [vmem:[%s931_s1 + $0xc0] sm:$0xff]   ;;  %v25_v38 = vpack.c.bf16 %v19_v37, %v19_v37  ;;  %v704_v39 = vld [vmem:[%s931_s1 + $0x138] sm:$0xff]  }
   0xc   :  { %610 = vmatprep.subr.bf16.mxu0 %v683_v12  ;;  %v698_v27 = vld [vmem:[%s931_s1 + $0x88] sm:$0xff]   ;;  %v702_v33 = vld [vmem:[%s931_s1 + $0x80] sm:$0xff]   ;;  %v18_v40 = vld [vmem:[%s930_s0 + $0x10] sm:$0xff] }
   0xd   :  { %631 = vmatpush3.bf16.msra.mxu1 %v682_v11  ;;  %v17_v31 = vld [vmem:[%s930_s0 + $0x8] sm:$0xff]  ;;  %v16_v34 = vld [vmem:[%s930_s0] sm:$0xff]  ;;  %491 = vmatprep.mubr.bf16.mxu1 %v25_v38  ;;  %v24_v41 = vpack.c.bf16 %v18_v40, %v18_v40  ;;  %v705_v42 = vld [vmem:[%s931_s1 + $0x170] sm:$0xff]  }
   0xe   :  { %632 = vmatprep.subr.bf16.mxu1 %v685_v14  ;;  %v23_v32 = vpack.c.bf16 %v17_v31, %v17_v31  ;;  %v22_v35 = vpack.c.bf16 %v16_v34, %v16_v34  ;;  %v706_v43 = vld [vmem:[%s931_s1 + $0x130] sm:$0xff]   ;;  %v707_v44 = vld [vmem:[%s931_s1 + $0x168] sm:$0xff]   ;;  %v709_v46 = vld [vmem:[%s931_s1 + $0x160] sm:$0xff]  }
   0xf   :  { %611 = vmatpush3.bf16.msra.mxu0 %v684_v13  ;;  %v708_v45 = vld [vmem:[%s931_s1 + $0x128] sm:$0xff]   ;;  %v710_v47 = vld [vmem:[%s931_s1 + $0x120] sm:$0xff]   ;;  %v711_v48 = vld [vmem:[%s931_s1 + $0x158] sm:$0xff]  }
  0x10   :  { %612 = vmatprep.subr.bf16.mxu0 %v687_v16  ;;  %451 = vmatprep.mubr.bf16.mxu0 %v23_v32  ;;  %v712_v49 = vld [vmem:[%s931_s1 + $0x118] sm:$0xff]   ;;  %v713_v50 = vld [vmem:[%s931_s1 + $0x150] sm:$0xff]   ;;  %v21_v51 = vld [vmem:[%s930_s0 + $0x28] sm:$0xff] }
  0x11   :  { %633 = vmatpush3.bf16.msra.mxu1 %v686_v15  ;;  %v27_v52 = vpack.c.bf16 %v21_v51, %v21_v51 }
  0x12   :  { %634 = vmatprep.subr.bf16.mxu1 %v689_v18 }
  0x13   :  { %613 = vmatpush3.bf16.msra.mxu0 %v688_v17 }
  0x14   :  { %614 = vmatprep.subr.bf16.mxu0 %v691_v20 }
  0x15   :  { %635 = vmatpush3.bf16.msra.mxu1 %v690_v19 }
  0x16   :  { %636 = vmatprep.subr.bf16.mxu1 %v693_v22 }
  0x17   :  { %615 = vmatpush3.bf16.msra.mxu0 %v692_v21 }
  0x18   :  { %616 = vmatprep.subr.bf16.mxu0 %v695_v24 }
  0x19   :  { %637 = vmatpush3.bf16.msra.mxu1 %v694_v23 }
  0x1a   :  { %638 = vmatprep.subr.bf16.mxu1 %v697_v26 }
  0x1b   :  { %617 = vmatpush3.bf16.msra.mxu0 %v696_v25 }
  0x1c   :  { %618 = vmatprep.subr.bf16.mxu0 %v699_v28 }
  0x1d   :  { %639 = vmatpush3.bf16.msra.mxu1 %v698_v27 }
  0x1e   :  { %640 = vmatprep.subr.bf16.mxu1 %v701_v30 }
  0x1f   :  { %619 = vmatpush3.bf16.msra.mxu0 %v700_v29 }
  0x20   :  { %648 = vmatprep.subr.bf16.mxu0 %v703_v36 }
  0x21   :  { %641 = vmatpush3.bf16.msra.mxu1 %v702_v33 }
  0x22   :  { %452 = vmatmul.mubr.bf16.vlgmr.msra.gmra.mxu0 %v22_v35 }
  0x23   :  { %649 = vmatpush3.bf16.msra.mxu0 %v704_v39 }
  0x24   :  { %492 = vmatmul.mubr.bf16.vlgmr.msra.gmra.mxu1 %v24_v41  ;;  %650 = vmatprep.subr.bf16.mxu0 %v705_v42 }
  0x27   :  { %651 = vmatpush3.bf16.msra.mxu0 %v706_v43 }
  0x28   :  { %652 = vmatprep.subr.bf16.mxu0 %v707_v44 }
  0x2b   :  { %653 = vmatpush3.bf16.msra.mxu0 %v708_v45 }
  0x2c   :  { %654 = vmatprep.subr.bf16.mxu0 %v709_v46 }
  0x2f   :  { %655 = vmatpush3.bf16.msra.mxu0 %v710_v47 }
  0x30   :  { %656 = vmatprep.subr.bf16.mxu0 %v711_v48 }
  0x31   :  { %8 = vsyncpa [#allocation3], 0  ;;  %v714_v53 = vld [vmem:[%s931_s1 + $0x110] sm:$0xff]   ;;  %531 = vmatprep.mubr.bf16.mxu0 %v27_v52  ;;  %v715_v54 = vld [vmem:[%s931_s1 + $0x148] sm:$0xff]   ;;  %vm539_vm0 = vcmask 523264  }
  0x32   :  { %v716_v55 = vld [vmem:[%s931_s1 + $0x108] sm:$0xff]   ;;  %v717_v56 = vld [vmem:[%s931_s1 + $0x140] sm:$0xff]  }
  0x33   :  { %657 = vmatpush3.bf16.msra.mxu0 %v712_v49  ;;  %v718_v57 = vld [vmem:[%s931_s1 + $0x100] sm:$0xff]  }
  0x34   :  { %658 = vmatprep.subr.bf16.mxu0 %v713_v50  ;;  %v20_v58 = vld [vmem:[%s930_s0 + $0x20] sm:$0xff]  ;;  %s741_s0 = smov [#allocation2]  }
  0x35   :  { %v26_v59 = vpack.c.bf16 %v20_v58, %v20_v58  ;;  %v555_v5 = vld [vmem:[%s932_s2] ss:$0 sm:$0xff]  ;;  %s547_s1 = sshll.u32 %s741_s0, 4  ;;  %s548_s1 = int_to_ptr.vmem [resolvable:$true] %s547_s1 }
  0x36   :  { %s719_s14 = scalar_lea.vmem %s548_s1, 128  ;;  %p724_p1 = scmp.lt.s32.totalorder %s548_s1, %s548_s1 }
  0x37   :  { %659 = vmatpush3.bf16.msra.mxu0 %v714_v53  ;;  %p720_p0 = scmp.ne.s32.totalorder %s548_s1, %s719_s14  ;;  %p725_p2 = scmp.lt.s32.totalorder %s719_s14, %s719_s14 }
  0x38   :  { %660 = vmatprep.subr.bf16.mxu0 %v715_v54 }
  0x39   :  { %p726_p3 = por %p725_p2, %p724_p1 }
  0x3b   :  { %661 = vmatpush3.bf16.msra.mxu0 %v716_v55  ;;  %p727_p4 = pnand %p726_p3, %p720_p0 }
  0x3c   :  { %662 = vmatprep.subr.bf16.mxu0 %v717_v56 }
  0x3f   :  { %663 = vmatpush3.bf16.msra.mxu0 %v718_v57 }
  0x42   :  { %532 = vmatmul.mubr.bf16.vlgmr.msra.gmra.mxu0 %v26_v59 }
  0xe2   :  { %v620_v60 = vpop.f32.mrf.mxu0 }
  0xe4   :  { %v621_v61 = vpop.f32.mrf.mxu0  ;;  %v642_v62 = vpop.f32.mrf.mxu1 }
  0xe5   :  { %v622_v4 = vadd.f32 %v621_v61, %v620_v60 }
  0xe6   :  { %v623_v63 = vpop.f32.mrf.mxu0  ;;  %v643_v0 = vpop.f32.mrf.mxu1 }
  0xe7   :  { %v454_v6 = vadd.f32 %v622_v4, %v555_v5  ;;  %v644_v7 = vadd.f32 %v643_v0, %v642_v62 }
  0xe8   :  { %v624_v1 = vpop.f32.mrf.mxu0  ;;  %v645_v2 = vpop.f32.mrf.mxu1 }
  0xe9   :  { %v494_v10 = vadd.f32 %v644_v7, %v454_v6 }
  0xea   :  { %v646_v3 = vpop.f32.mrf.mxu1 }
 0x102   :  { %v664_v8 = vpop.f32.mrf.mxu0 }
 0x104   :  { %v665_v9 = vpop.f32.mrf.mxu0 }
 0x105   :  { %v666_v11 = vadd.f32 %v665_v9, %v664_v8 }
 0x106   :  { %v667_v12 = vpop.f32.mrf.mxu0 }
 0x107   :  { %v534_v13 = vadd.f32 %v666_v11, %v494_v10 }
 0x108   :  { %v668_v14 = vpop.f32.mrf.mxu0 }
 0x109   :  { %540 = vst.msk [vmem:[#allocation2] sm:$0xff] %vm539_vm0, %v534_v13 }
 0x10a   :  { %730 = shalt.err (!%p727_p4)
}
 0x10b   :  { %550 = dma.vmem_to_hbm [thread:$0]  %s548_s1, 128, %s933_s3, [#allocation3]  }
 0x10c   :  { %739 = dma.done.wait [#allocation3], 128  }
 0x10d   :  { %740 = vsyncadd [#allocation3], 4294967168 }
 0x10e   :  { %554 = vsyncpa [#allocation3], 1 }

</bundles_post_ra>
